<compile_context>
chip_gen: v6e
topology: v6e:2x2x1
jax: 0.10.0
libtpu: 0.0.40
codegen_flags: <defaults>
</compile_context>

<pallas_src>
import functools

import jax
import jax.numpy as jnp
from jax.experimental import pallas as pl
from jax.experimental.pallas import tpu as pltpu


def _round_up(x, m):
    return ((x + m - 1) // m) * m


def _binary_dice_kernel(pred_ref, gt_ref, tp_ref, den_ref):
    """Accumulate per-sample partial sums into lane-dense (N, SUB, 128) outputs.

    pred_ref / gt_ref : (N, SUB, TD) tile of the packed inputs.
    tp_ref            : (N, SUB, 128) running sum of pred * gt   (intersection)
    den_ref           : (N, SUB, 128) running sum of pred + gt   (denominator)
    Grid = (P parallel chunks, T tiles per chunk); axis 1 is the reduction axis.
    """
    t = pl.program_id(1)

    @pl.when(t == 0)
    def _():
        tp_ref[...] = jnp.zeros_like(tp_ref)
        den_ref[...] = jnp.zeros_like(den_ref)

    n, sub, td = pred_ref.shape
    tp_part = jnp.zeros((n, sub, 128), jnp.float32)
    den_part = jnp.zeros((n, sub, 128), jnp.float32)

    # Fold the lane axis 128 lanes at a time with pure VPU adds (no per-step
    # XLU reductions); loads come straight from the ref slice so register
    # pressure stays bounded.
    for j in range(td // 128):
        pj = pred_ref[:, :, j * 128:(j + 1) * 128].astype(jnp.float32)
        gj = gt_ref[:, :, j * 128:(j + 1) * 128].astype(jnp.float32)
        tp_part = tp_part + pj * gj
        den_part = den_part + (pj + gj)

    tp_ref[...] += tp_part
    den_ref[...] += den_part


@functools.partial(jax.jit, static_argnames=("tile_d",))
def binary_dice_loss(y_pr, y_gt, tile_d=2048):
    """BinaryDiceLoss forward. y_pr, y_gt: (N, ...) float arrays (f32 or bf16)."""
    N = y_pr.shape[0]
    smooth = 1.0

    pred = y_pr.reshape(N, -1)
    gt = y_gt.reshape(N, -1)
    D = pred.shape[1]

    # Sublane packing factor: fill packed sublanes for the narrowest input dtype.
    min_itemsize = min(pred.dtype.itemsize, gt.dtype.itemsize)
    sub = max(8, 32 // int(min_itemsize))

    # Lane tile size: multiple of 128, capped by the (sublane-packed) lane
    # extent and by a VMEM budget (2 inputs x 2 pipeline buffers <= ~8 MiB so
    # default scoped VMEM works on v5e/v6e/v7x).
    l_aligned = _round_up(pl.cdiv(D, sub), 128)
    td = max(128, (min(int(tile_d), l_aligned) // 128) * 128)
    in_bytes = int(pred.dtype.itemsize) + int(gt.dtype.itemsize)
    vmem_budget = 8 * 1024 * 1024
    max_td = vmem_budget // (2 * N * sub * in_bytes)
    td = min(td, max(128, (max_td // 128) * 128))

    # Parallel split across TensorCores (v7x) when there is >1 lane tile.
    if l_aligned > td:
        num_par = 2
        lp = _round_up(l_aligned, 2 * td)
    else:
        num_par = 1
        lp = td
    tiles_per_chunk = (lp // td) // num_par

    # Zero-pad D (exact for this loss: pads add 0 to every sum) and pack sublanes.
    dp = sub * lp
    if dp != D:
        pred = jnp.pad(pred, ((0, 0), (0, dp - D)))
        gt = jnp.pad(gt, ((0, 0), (0, dp - D)))
    pred3 = pred.reshape(N, sub, lp)
    gt3 = gt.reshape(N, sub, lp)

    in_map = lambda p, t: (0, 0, p * tiles_per_chunk + t)
    out_map = lambda p, t: (p, 0, 0, 0)

    tp_part, den_part = pl.pallas_call(
        _binary_dice_kernel,
        out_shape=(
            jax.ShapeDtypeStruct((num_par, N, sub, 128), jnp.float32),
            jax.ShapeDtypeStruct((num_par, N, sub, 128), jnp.float32),
        ),
        grid_spec=pltpu.PrefetchScalarGridSpec(
            num_scalar_prefetch=0,
            grid=(num_par, tiles_per_chunk),
            in_specs=[
                pl.BlockSpec((N, sub, td), in_map),
                pl.BlockSpec((N, sub, td), in_map),
            ],
            out_specs=[
                pl.BlockSpec((None, N, sub, 128), out_map),
                pl.BlockSpec((None, N, sub, 128), out_map),
            ],
        ),
        compiler_params=pltpu.CompilerParams(
            dimension_semantics=("parallel", "arbitrary"),
        ),
    )(pred3, gt3)

    # Tiny epilogue in plain JAX: final cross-lane/sublane reduce + dice + loss.
    tp = jnp.sum(tp_part, axis=(0, 2, 3))    # (N,)  sum(pred * gt)
    den = jnp.sum(den_part, axis=(0, 2, 3))  # (N,)  sum(pred) + sum(gt)
    dice = (2.0 * tp + smooth) / (den + smooth)
    return 1.0 - jnp.sum(dice) / N


def _binary_dice_loss_ref(y_pr, y_gt):
    """Pure-JAX reference mirroring the PyTorch BinaryDiceLoss module."""
    N = y_pr.shape[0]
    smooth = 1.0
    p = y_pr.reshape(N, -1).astype(jnp.float32)
    g = y_gt.reshape(N, -1).astype(jnp.float32)
    inter = jnp.sum(p * g, axis=1)
    dice = (2.0 * inter + smooth) / (jnp.sum(p, axis=1) + jnp.sum(g, axis=1) + smooth)
    return 1.0 - jnp.sum(dice) / N


if __name__ == "__main__":
    key = jax.random.PRNGKey(0)
    k1, k2, k3, k4 = jax.random.split(key, 4)

    # Case 1: canonical small NCHW input (f32, single tile, no padding).
    N, C, H, W = 2, 4, 16, 16
    y_pr = jax.random.uniform(k1, (N, C, H, W), dtype=jnp.float32)           # probabilities
    y_gt = (jax.random.uniform(k2, (N, C, H, W)) > 0.5).astype(jnp.float32)  # binary masks
    loss = binary_dice_loss(y_pr, y_gt)
    jax.block_until_ready(loss)
    ref = _binary_dice_loss_ref(y_pr, y_gt)
    assert jnp.allclose(loss, ref, atol=1e-5, rtol=1e-5), (loss, ref)

    # Case 2: bf16 ingest (halves HBM traffic; kernel accumulates in f32).
    loss_bf16 = binary_dice_loss(y_pr.astype(jnp.bfloat16), y_gt.astype(jnp.bfloat16))
    jax.block_until_ready(loss_bf16)
    ref_bf16 = _binary_dice_loss_ref(y_pr.astype(jnp.bfloat16), y_gt.astype(jnp.bfloat16))
    assert jnp.allclose(loss_bf16, ref_bf16, atol=1e-4, rtol=1e-4), (loss_bf16, ref_bf16)

    # Case 3: ragged D (zero padding) + multi-tile reduction + 2-way parallel split.
    N2, C2, H2, W2 = 3, 4, 28, 28
    y_pr2 = jax.random.uniform(k3, (N2, C2, H2, W2), dtype=jnp.float32)
    y_gt2 = (jax.random.uniform(k4, (N2, C2, H2, W2)) > 0.5).astype(jnp.float32)
    loss2 = binary_dice_loss(y_pr2, y_gt2, tile_d=128)
    jax.block_until_ready(loss2)
    ref2 = _binary_dice_loss_ref(y_pr2, y_gt2)
    assert jnp.allclose(loss2, ref2, atol=1e-5, rtol=1e-5), (loss2, ref2)

    print("KERNEL_OK")
</pallas_src>

<mosaic_0001>
module attributes {stable_mosaic.version = 11 : i64} {
  func.func @_binary_dice_kernel(%arg0: i32, %arg1: i32, %arg2: memref<2x8x128xf32, #tpu.memory_space<vmem>>, %arg3: memref<2x8x128xf32, #tpu.memory_space<vmem>>, %arg4: memref<1x2x8x128xf32, #tpu.memory_space<vmem>>, %arg5: memref<1x2x8x128xf32, #tpu.memory_space<vmem>>) attributes {dimension_semantics = [#tpu.dimension_semantics<parallel>, #tpu.dimension_semantics<arbitrary>], iteration_bounds = array<i64: 1, 1>, scalar_prefetch = 0 : i64, scratch_operands = 0 : i64, tpu.core_type = #tpu.core_type<tc>, window_params = [{transform_indices = @transform_0, window_bounds = array<i64: 2, 8, 128>}, {transform_indices = @transform_1, window_bounds = array<i64: 2, 8, 128>}, {transform_indices = @transform_2, window_bounds = array<i64: 1, 2, 8, 128>}, {transform_indices = @transform_3, window_bounds = array<i64: 1, 2, 8, 128>}]} {
    %c0_i32 = arith.constant 0 : i32
    %0 = arith.cmpi eq, %arg1, %c0_i32 : i32
    %1 = arith.extui %0 : i1 to i32
    %c0_i32_0 = arith.constant 0 : i32
    %2 = arith.cmpi ne, %1, %c0_i32_0 : i32
    scf.if %2 {
      %cst_23 = arith.constant 0.000000e+00 : f32
      %23 = vector.broadcast %cst_23 : f32 to vector<2x8x128xf32>
      %c0_24 = arith.constant 0 : index
      %c0_25 = arith.constant 0 : index
      %c0_26 = arith.constant 0 : index
      %c0_27 = arith.constant 0 : index
      %24 = vector.load %arg4[%c0_24, %c0_25, %c0_26, %c0_27] : memref<1x2x8x128xf32, #tpu.memory_space<vmem>>, vector<1x2x8x128xf32>
      %25 = vector.shape_cast %24 : vector<1x2x8x128xf32> to vector<2x8x128xf32>
      %26 = vector.shape_cast %23 : vector<2x8x128xf32> to vector<1x2x8x128xf32>
      tpu.vector_store %arg4[%c0_24, %c0_25, %c0_26, %c0_27], %26 {strides = array<i32>} : memref<1x2x8x128xf32, #tpu.memory_space<vmem>>, vector<1x2x8x128xf32>,
      %cst_28 = arith.constant 0.000000e+00 : f32
      %27 = vector.broadcast %cst_28 : f32 to vector<2x8x128xf32>
      %c0_29 = arith.constant 0 : index
      %c0_30 = arith.constant 0 : index
      %c0_31 = arith.constant 0 : index
      %c0_32 = arith.constant 0 : index
      %28 = vector.load %arg5[%c0_29, %c0_30, %c0_31, %c0_32] : memref<1x2x8x128xf32, #tpu.memory_space<vmem>>, vector<1x2x8x128xf32>
      %29 = vector.shape_cast %28 : vector<1x2x8x128xf32> to vector<2x8x128xf32>
      %30 = vector.shape_cast %27 : vector<2x8x128xf32> to vector<1x2x8x128xf32>
      tpu.vector_store %arg5[%c0_29, %c0_30, %c0_31, %c0_32], %30 {strides = array<i32>} : memref<1x2x8x128xf32, #tpu.memory_space<vmem>>, vector<1x2x8x128xf32>,
    } else {
    }
    %cst = arith.constant 0.000000e+00 : f32
    %3 = vector.broadcast %cst : f32 to vector<2x8x128xf32>
    %cst_1 = arith.constant 0.000000e+00 : f32
    %4 = vector.broadcast %cst_1 : f32 to vector<2x8x128xf32>
    %c0 = arith.constant 0 : index
    %c0_2 = arith.constant 0 : index
    %c0_3 = arith.constant 0 : index
    %5 = vector.load %arg2[%c0, %c0_2, %c0_3] : memref<2x8x128xf32, #tpu.memory_space<vmem>>, vector<2x8x128xf32>
    %c0_4 = arith.constant 0 : index
    %c0_5 = arith.constant 0 : index
    %c0_6 = arith.constant 0 : index
    %6 = vector.load %arg3[%c0_4, %c0_5, %c0_6] : memref<2x8x128xf32, #tpu.memory_space<vmem>>, vector<2x8x128xf32>
    %7 = arith.mulf %5, %6 : vector<2x8x128xf32>
    %8 = arith.addf %3, %7 : vector<2x8x128xf32>
    %9 = arith.addf %5, %6 : vector<2x8x128xf32>
    %10 = arith.addf %4, %9 : vector<2x8x128xf32>
    %c0_7 = arith.constant 0 : index
    %c0_8 = arith.constant 0 : index
    %c0_9 = arith.constant 0 : index
    %c0_10 = arith.constant 0 : index
    %11 = vector.load %arg4[%c0_7, %c0_8, %c0_9, %c0_10] : memref<1x2x8x128xf32, #tpu.memory_space<vmem>>, vector<1x2x8x128xf32>
    %12 = vector.shape_cast %11 : vector<1x2x8x128xf32> to vector<2x8x128xf32>
    %13 = arith.addf %12, %8 : vector<2x8x128xf32>
    %c0_11 = arith.constant 0 : index
    %c0_12 = arith.constant 0 : index
    %c0_13 = arith.constant 0 : index
    %c0_14 = arith.constant 0 : index
    %14 = vector.load %arg4[%c0_11, %c0_12, %c0_13, %c0_14] : memref<1x2x8x128xf32, #tpu.memory_space<vmem>>, vector<1x2x8x128xf32>
    %15 = vector.shape_cast %14 : vector<1x2x8x128xf32> to vector<2x8x128xf32>
    %16 = vector.shape_cast %13 : vector<2x8x128xf32> to vector<1x2x8x128xf32>
    tpu.vector_store %arg4[%c0_11, %c0_12, %c0_13, %c0_14], %16 {strides = array<i32>} : memref<1x2x8x128xf32, #tpu.memory_space<vmem>>, vector<1x2x8x128xf32>,
    %c0_15 = arith.constant 0 : index
    %c0_16 = arith.constant 0 : index
    %c0_17 = arith.constant 0 : index
    %c0_18 = arith.constant 0 : index
    %17 = vector.load %arg5[%c0_15, %c0_16, %c0_17, %c0_18] : memref<1x2x8x128xf32, #tpu.memory_space<vmem>>, vector<1x2x8x128xf32>
    %18 = vector.shape_cast %17 : vector<1x2x8x128xf32> to vector<2x8x128xf32>
    %19 = arith.addf %18, %10 : vector<2x8x128xf32>
    %c0_19 = arith.constant 0 : index
    %c0_20 = arith.constant 0 : index
    %c0_21 = arith.constant 0 : index
    %c0_22 = arith.constant 0 : index
    %20 = vector.load %arg5[%c0_19, %c0_20, %c0_21, %c0_22] : memref<1x2x8x128xf32, #tpu.memory_space<vmem>>, vector<1x2x8x128xf32>
    %21 = vector.shape_cast %20 : vector<1x2x8x128xf32> to vector<2x8x128xf32>
    %22 = vector.shape_cast %19 : vector<2x8x128xf32> to vector<1x2x8x128xf32>
    tpu.vector_store %arg5[%c0_19, %c0_20, %c0_21, %c0_22], %22 {strides = array<i32>} : memref<1x2x8x128xf32, #tpu.memory_space<vmem>>, vector<1x2x8x128xf32>,
    return
  }
  func.func @transform_0(%arg0: i32, %arg1: i32) -> (i32, i32, i32) {
    %c1_i32 = arith.constant 1 : i32
    %0 = arith.muli %arg0, %c1_i32 : i32
    %1 = arith.addi %0, %arg1 : i32
    %c0_i32 = arith.constant 0 : i32
    %c0_i32_0 = arith.constant 0 : i32
    %c0_i32_1 = arith.constant 0 : i32
    return %c0_i32, %c0_i32_0, %1 : i32, i32, i32
  }
  func.func @transform_1(%arg0: i32, %arg1: i32) -> (i32, i32, i32) {
    %c1_i32 = arith.constant 1 : i32
    %0 = arith.muli %arg0, %c1_i32 : i32
    %1 = arith.addi %0, %arg1 : i32
    %c0_i32 = arith.constant 0 : i32
    %c0_i32_0 = arith.constant 0 : i32
    %c0_i32_1 = arith.constant 0 : i32
    return %c0_i32, %c0_i32_0, %1 : i32, i32, i32
  }
  func.func @transform_2(%arg0: i32, %arg1: i32) -> (i32, i32, i32, i32) {
    %c0_i32 = arith.constant 0 : i32
    %c0_i32_0 = arith.constant 0 : i32
    %c0_i32_1 = arith.constant 0 : i32
    %c0_i32_2 = arith.constant 0 : i32
    return %arg0, %c0_i32, %c0_i32_0, %c0_i32_1 : i32, i32, i32, i32
  }
  func.func @transform_3(%arg0: i32, %arg1: i32) -> (i32, i32, i32, i32) {
    %c0_i32 = arith.constant 0 : i32
    %c0_i32_0 = arith.constant 0 : i32
    %c0_i32_1 = arith.constant 0 : i32
    %c0_i32_2 = arith.constant 0 : i32
    return %arg0, %c0_i32, %c0_i32_0, %c0_i32_1 : i32, i32, i32, i32
  }
}

</mosaic_0001>

<bundles_post_ra>
// kernel: binary_dice_loss.1
= control target key start
LH: loop header
LB: loop body
LE: loop exit
PB: predicated region body
PF: predicated region fallthrough
CT: control target
= control target key end

     0   :  { %s144_s0 = inlined_call_operand.vmem [shape: f32[2,8,128], index: 0, kind: input, shape index: {}]   ;;  %s145_s1 = inlined_call_operand.vmem [shape: f32[2,8,128], index: 1, kind: input, shape index: {}]   ;;  %s146_s2 = inlined_call_operand.vmem [shape: f32[1,2,8,128], index: 2, kind: output, shape index: {0}]   ;;  %s147_s3 = inlined_call_operand.vmem [shape: f32[1,2,8,128], index: 3, kind: output, shape index: {1}]  }
   0x1   :  { %v55_v0 = vld [vmem:[%s144_s0] sm:$0xff]  ;;  %v56_v2 = vld [vmem:[%s144_s0 + $0x8] sm:$0xff] }
   0x2   :  { %v57_v1 = vld [vmem:[%s145_s1] sm:$0xff]  ;;  %v58_v4 = vld [vmem:[%s145_s1 + $0x8] sm:$0xff] }
   0x3   :  { %v59_v3 = vmul.f32 %v57_v1, %v55_v0  ;;  %v63_v5 = vadd.f32 %v57_v1, %v55_v0  ;;  %v60_v6 = vmul.f32 %v58_v4, %v56_v2  ;;  %v64_v7 = vadd.f32 %v58_v4, %v56_v2 }
   0x5   :  { %71 = vst [vmem:[%s146_s2] sm:$0xff] %v59_v3  ;;  %77 = vst [vmem:[%s147_s3] sm:$0xff] %v63_v5 }
   0x6   :  { %72 = vst [vmem:[%s146_s2 + $0x8] sm:$0xff] %v60_v6  ;;  %78 = vst [vmem:[%s147_s3 + $0x8] sm:$0xff] %v64_v7 }

</bundles_post_ra>
